<compile_context>
chip_gen: v5e
topology: v5e:2x2
jax: 0.10.0
libtpu: 0.0.40
codegen_flags: <defaults>
</compile_context>

<pallas_src>
import functools

import numpy as np
import jax
import jax.numpy as jnp
from jax import lax
from jax.experimental import pallas as pl
from jax.experimental.pallas import tpu as pltpu


# ----------------------------------------------------------------------------
# Gaussian weights exactly as the PyTorch __init__ produces them (cv2.GaussianBlur
# on a kernel-sized delta image, separable Gaussian, BORDER_REFLECT_101).
# ----------------------------------------------------------------------------
def _gauss1d(ksize: int, sigma: float) -> np.ndarray:
    xs = np.arange(ksize, dtype=np.float64) - (ksize - 1) / 2.0
    g = np.exp(-0.5 * (xs / sigma) ** 2)
    return g / g.sum()


def _cv2_gaussian_on_delta_1d(ksize: int, sigma: float) -> np.ndarray:
    """1-D factor of the module's 2-D weights (the 2-D weights are its outer product)."""
    r = ksize // 2
    g1 = _gauss1d(ksize, sigma)
    delta = np.zeros((ksize,), dtype=np.float64)
    delta[r] = 1.0
    padded = np.pad(delta, r, mode="reflect")  # == cv2 BORDER_REFLECT_101
    out = np.array([np.dot(padded[i:i + ksize], g1) for i in range(ksize)])
    return out.astype(np.float32)


def _cv2_gaussian_on_delta_2d(ksize: int, sigma: float) -> np.ndarray:
    r = ksize // 2
    g1 = _gauss1d(ksize, sigma)
    k2 = np.outer(g1, g1)
    delta = np.zeros((ksize, ksize), dtype=np.float64)
    delta[r, r] = 1.0
    padded = np.pad(delta, r, mode="reflect")
    out = np.zeros((ksize, ksize), dtype=np.float64)
    for i in range(ksize):
        for j in range(ksize):
            out[i, j] = np.sum(padded[i:i + ksize, j:j + ksize] * k2)
    return out.astype(np.float32)


_G3_1D = _cv2_gaussian_on_delta_1d(3, 1.0)
_G5_1D = _cv2_gaussian_on_delta_1d(5, 1.0)
_G3 = _cv2_gaussian_on_delta_2d(3, 1.0)   # matches self.gaussian3 (1,1,3,3) squeezed
_G5 = _cv2_gaussian_on_delta_2d(5, 1.0)   # matches self.gaussian5 (1,1,5,5) squeezed

# The 2-D conv weights are exactly rank-1 and symmetric -> separable, folded taps exact.
assert np.allclose(np.outer(_G3_1D, _G3_1D), _G3, atol=1e-6)
assert np.allclose(np.outer(_G5_1D, _G5_1D), _G5, atol=1e-6)
assert np.allclose(_G3_1D, _G3_1D[::-1]) and np.allclose(_G5_1D, _G5_1D[::-1])


# ----------------------------------------------------------------------------
# Pin pltpu.roll's rotation direction once (lane axis and sublane axis) so the
# boundary masks below are independent of the rotate convention.
# ----------------------------------------------------------------------------
@functools.lru_cache(maxsize=None)
def _roll_dirs():
    def probe(x_ref, lane_ref, sub_ref):
        x = x_ref[...]
        lane_ref[...] = pltpu.roll(x, 1, 1)
        sub_ref[...] = pltpu.roll(x, 1, 0)

    x = jnp.arange(8 * 128, dtype=jnp.float32).reshape(8, 128)
    lane, sub = pl.pallas_call(
        probe,
        out_shape=(jax.ShapeDtypeStruct((8, 128), jnp.float32),
                   jax.ShapeDtypeStruct((8, 128), jnp.float32)),
    )(x)
    xn = np.arange(8 * 128, dtype=np.float32).reshape(8, 128)

    def direction(out, axis):
        o = np.asarray(out)
        if np.array_equal(o, np.roll(xn, 1, axis=axis)):
            return 1     # out[i] = in[(i - shift) % n]   (jnp.roll convention)
        if np.array_equal(o, np.roll(xn, -1, axis=axis)):
            return -1    # out[i] = in[(i + shift) % n]
        return 1         # fall back to the documented jnp.roll convention

    return direction(lane, 1), direction(sub, 0)


# ----------------------------------------------------------------------------
# Kernel
# ----------------------------------------------------------------------------
def _make_prl_kernel(method: str, h: int, w: int, hp: int, wp: int,
                     dir_lane: int, dir_sub: int):
    w3 = tuple(float(x) for x in _G3_1D)
    w5 = tuple(float(x) for x in _G5_1D)

    if method == "MAE":
        ewise = jnp.abs
    elif method == "MSE":
        ewise = lambda x: x * x
    else:
        raise ValueError(f"unknown method: {method}")

    def kernel(p_ref, g_ref, o_ref):
        # blur the DIFFERENCE once (conv is linear); zero in the padded rows/cols.
        d = p_ref[0] - g_ref[0]                                     # (hp, wp) f32

        col = lax.broadcasted_iota(jnp.int32, (hp, wp), 1)
        row = lax.broadcasted_iota(jnp.int32, (hp, wp), 0)

        def shift_c(x, m):
            # out[i, j] = x[i, j + m], zero wherever j + m falls outside [0, w).
            r = pltpu.roll(x, (-m * dir_lane) % wp, 1)
            if m > 0:
                return jnp.where(col < (w - m), r, 0.0)
            return jnp.where((col >= -m) & (col < w), r, 0.0)

        def shift_r(x, m):
            # out[i, j] = x[i + m, j], zero wherever i + m falls outside [0, h).
            r = pltpu.roll(x, (-m * dir_sub) % hp, 0)
            if m > 0:
                return jnp.where(row < (h - m), r, 0.0)
            return jnp.where((row >= -m) & (row < h), r, 0.0)

        # ---- horizontal (lane) pass: 4 rolls, windows shared by 3-tap & 5-tap ----
        c1 = shift_c(d, -1) + shift_c(d, 1)
        c2 = shift_c(d, -2) + shift_c(d, 2)
        t3 = w3[1] * d + w3[0] * c1                                 # (hp, wp)
        t5 = w5[2] * d + w5[1] * c1 + w5[0] * c2                    # (hp, wp)

        # ---- vertical (sublane) pass: kept in registers, 6 rolls ----
        b3 = w3[1] * t3 + w3[0] * (shift_r(t3, -1) + shift_r(t3, 1))
        b5 = (w5[2] * t5
              + w5[1] * (shift_r(t5, -1) + shift_r(t5, 1))
              + w5[0] * (shift_r(t5, -2) + shift_r(t5, 2)))

        acc = ewise(d) + 15.0 * ewise(b3) + 3.0 * ewise(b5)         # zero in pad region

        # Single sublane reduction per image; the tiny (N, Wp) lane/batch reduction
        # and the mean division happen in the wrapper (lane-dense output block).
        o_ref[...] = jnp.sum(acc, axis=0, keepdims=True)[None]      # (1, 1, wp)

    return kernel


def prl_loss(preds, gts, method="MAE"):
    """preds, gts: (N, 1, H, W) float32. Returns scalar loss (float32)."""
    n, c, h, w = preds.shape
    assert c == 1, "PRL conv weights are (1,1,k,k): single-channel input expected"
    hp = ((h + 7) // 8) * 8          # sublane-aligned rows
    wp = ((w + 127) // 128) * 128    # lane-dense columns (unmasked vld/vst)

    p = preds.reshape(n, h, w).astype(jnp.float32)
    g = gts.reshape(n, h, w).astype(jnp.float32)
    if (hp, wp) != (h, w):
        pad = ((0, 0), (0, hp - h), (0, wp - w))
        p = jnp.pad(p, pad)
        g = jnp.pad(g, pad)

    dir_lane, dir_sub = _roll_dirs()
    kernel = _make_prl_kernel(method, h, w, hp, wp, dir_lane, dir_sub)

    # Double-buffered p,g blocks + a generous allowance for in-kernel live values.
    block_bytes = hp * wp * 4
    vmem_limit = int(min(max(12 * block_bytes + (1 << 20), 16 * (1 << 20)),
                         100 * (1 << 20)))

    partial_rows = pl.pallas_call(
        kernel,
        out_shape=jax.ShapeDtypeStruct((n, 1, wp), jnp.float32),
        grid_spec=pltpu.PrefetchScalarGridSpec(
            num_scalar_prefetch=0,
            grid=(n,),
            in_specs=[pl.BlockSpec((1, hp, wp), lambda i: (i, 0, 0)),
                      pl.BlockSpec((1, hp, wp), lambda i: (i, 0, 0))],
            out_specs=pl.BlockSpec((1, 1, wp), lambda i: (i, 0, 0))),
        compiler_params=pltpu.CompilerParams(
            dimension_semantics=("parallel",),
            vmem_limit_bytes=vmem_limit),
    )(p, g)

    # mean over N * C(=1) * H * W real elements (padded rows/cols contribute zero).
    return jnp.sum(partial_rows) / jnp.float32(n * c * h * w)


# ----------------------------------------------------------------------------
# Pure-JAX reference of the PyTorch forward (uses the baked 2-D weights).
# ----------------------------------------------------------------------------
def _ref_loss(preds, gts, method):
    def cost(a, b):
        d = a - b
        return jnp.mean(jnp.abs(d)) if method == "MAE" else jnp.mean(d * d)

    def blur(x, k):
        kk = jnp.asarray(k, jnp.float32).reshape(1, 1, *k.shape)
        pad = k.shape[0] // 2
        return lax.conv_general_dilated(
            x, kk, (1, 1), [(pad, pad), (pad, pad)],
            dimension_numbers=("NCHW", "OIHW", "NCHW"))

    l1 = cost(preds, gts)
    l2 = cost(blur(preds, _G3), blur(gts, _G3))
    l3 = cost(blur(preds, _G5), blur(gts, _G5))
    return l1 + 15.0 * l2 + 3.0 * l3


if __name__ == "__main__":
    key = jax.random.PRNGKey(0)
    k1, k2 = jax.random.split(key)
    preds = jax.random.normal(k1, (2, 1, 16, 16), dtype=jnp.float32)
    gts = jax.random.normal(k2, (2, 1, 16, 16), dtype=jnp.float32)

    for method in ("MAE", "MSE"):
        loss = jax.block_until_ready(prl_loss(preds, gts, method=method))
        ref = jax.block_until_ready(_ref_loss(preds, gts, method))
        assert np.allclose(np.asarray(loss), np.asarray(ref), rtol=1e-4, atol=1e-4), (
            method, float(loss), float(ref))

    print("KERNEL_OK")
</pallas_src>

<mosaic_0001>
module attributes {stable_mosaic.version = 11 : i64} {
  func.func @probe(%arg0: memref<8x128xf32, #tpu.memory_space<vmem>>, %arg1: memref<8x128xf32, #tpu.memory_space<vmem>>, %arg2: memref<8x128xf32, #tpu.memory_space<vmem>>) attributes {dimension_semantics = [], scalar_prefetch = 0 : i64, scratch_operands = 0 : i64, tpu.core_type = #tpu.core_type<tc>} {
    %c0 = arith.constant 0 : index
    %c0_0 = arith.constant 0 : index
    %0 = vector.load %arg0[%c0, %c0_0] : memref<8x128xf32, #tpu.memory_space<vmem>>, vector<8x128xf32>
    %c1_i32 = arith.constant 1 : i32
    %1 = tpu.dynamic_rotate %0 by %c1_i32 dim 1 : vector<8x128xf32>, i32 -> vector<8x128xf32>
    %c0_1 = arith.constant 0 : index
    %c0_2 = arith.constant 0 : index
    %2 = vector.load %arg1[%c0_1, %c0_2] : memref<8x128xf32, #tpu.memory_space<vmem>>, vector<8x128xf32>
    tpu.vector_store %arg1[%c0_1, %c0_2], %1 {strides = array<i32>} : memref<8x128xf32, #tpu.memory_space<vmem>>, vector<8x128xf32>,
    %c1_i32_3 = arith.constant 1 : i32
    %3 = tpu.dynamic_rotate %0 by %c1_i32_3 dim 0 : vector<8x128xf32>, i32 -> vector<8x128xf32>
    %c0_4 = arith.constant 0 : index
    %c0_5 = arith.constant 0 : index
    %4 = vector.load %arg2[%c0_4, %c0_5] : memref<8x128xf32, #tpu.memory_space<vmem>>, vector<8x128xf32>
    tpu.vector_store %arg2[%c0_4, %c0_5], %3 {strides = array<i32>} : memref<8x128xf32, #tpu.memory_space<vmem>>, vector<8x128xf32>,
    return
  }
}

</mosaic_0001>

<bundles_post_ra>
// kernel: tpu_custom_call.1
= control target key start
LH: loop header
LB: loop body
LE: loop exit
PB: predicated region body
PF: predicated region fallthrough
CT: control target
= control target key end

     0   :  { %8 = vsyncpa [#allocation3], 0  ;;  %s175_s0 = inlined_call_operand.hbm [shape: f32[8,128], index: 0, kind: input, shape index: {}]   ;;  %s176_s1 = inlined_call_operand.hbm [shape: f32[8,128], index: 1, kind: output, shape index: {0}]   ;;  %s177_s2 = inlined_call_operand.hbm [shape: f32[8,128], index: 2, kind: output, shape index: {1}]  }
   0x1   :  { %9 = vsyncpa [#allocation4], 0 }
   0x2   :  { %10 = vsyncpa [#allocation7], 0  ;;  %s16_s11 = sshll.u32 %s175_s0, 4  ;;  %s147_s12 = smov [#allocation2]   ;;  %s17_s11 = int_to_ptr.hbm [resolvable:$true] %s16_s11 }
   0x3   :  { %s18_s13 = sshll.u32 %s147_s12, 4  ;;  %s19_s13 = int_to_ptr.vmem [resolvable:$true] %s18_s13 }
   0x4   :  { %21 = dma.hbm_to_vmem [thread:$0]  %s17_s11, 128, %s19_s13, [#allocation3]  }
   0x5   :  { %141 = dma.done.wait [#allocation3], 128  }
   0x6   :  { %142 = vsyncadd [#allocation3], 4294967168  ;;  %s148_s14 = smov [#allocation6]   ;;  %s50_s18 = sshll.u32 %s177_s2, 4  ;;  %v26_v0 = vld [vmem:[#allocation2] sm:$0xff]  ;;  %s51_s18 = int_to_ptr.hbm [resolvable:$true] %s50_s18 }
   0x7   :  { %s48_s15 = sshll.u32 %s148_s14, 4  ;;  %s149_s19 = smov 1   ;;  %v30_v1 = vrot.slane %v26_v0, 7  ;;  %s49_s15 = int_to_ptr.vmem [resolvable:$true] %s48_s15 }
   0x8   :  { %27 = vrot.lane.b32.xlu0 %v26_v0, %s149_s19  ;;  %s150_s0 = smov [#allocation5]   ;;  %s39_s23 = sshll.u32 %s176_s1, 4  ;;  %s40_s23 = int_to_ptr.hbm [resolvable:$true] %s39_s23 }
   0x9   :  { %31 = vst [vmem:[#allocation6] sm:$0xff] %v30_v1  ;;  %s37_s20 = sshll.u32 %s150_s0, 4  ;;  %s38_s20 = int_to_ptr.vmem [resolvable:$true] %s37_s20 }
   0xa   :  { %53 = dma.vmem_to_hbm [thread:$0]  %s49_s15, 128, %s51_s18, [#allocation7]  }
  0x7a   :  { %v28_v2 = vpop.permute.xlu0 %27 }
  0x7b   :  { %29 = vst [vmem:[#allocation5] sm:$0xff] %v28_v2 }
  0x7c   :  { %42 = dma.vmem_to_hbm [thread:$0]  %s38_s20, 128, %s40_s23, [#allocation4]  }
  0x7d   :  { %143 = dma.done.wait [#allocation4], 128  }
  0x7e   :  { %144 = vsyncadd [#allocation4], 4294967168 }
  0x7f   :  { %145 = dma.done.wait [#allocation7], 128  }
  0x80   :  { %146 = vsyncadd [#allocation7], 4294967168 }
  0x81   :  { %62 = vsyncpa [#allocation3], 1 }
  0x82   :  { %63 = vsyncpa [#allocation4], 1 }
  0x83   :  { %64 = vsyncpa [#allocation7], 1 }

</bundles_post_ra>
